<compile_context>
chip_gen: v7x
topology: tpu7x:2x2x1
jax: 0.10.0
libtpu: 0.0.40
codegen_flags: <defaults>
</compile_context>

<pallas_src>
import jax
import jax.numpy as jnp
from jax.experimental import pallas as pl
from jax.experimental.pallas import tpu as pltpu


def _round_up(x, m):
    return ((x + m - 1) // m) * m


def _pad2d(a, rows, cols):
    return jnp.pad(a, ((0, rows - a.shape[0]), (0, cols - a.shape[1])))


def ffw_kernel(x_ref, w1_ref, b1_ref, w2_ref, b2_ref, o_ref, acc_ref):
    """One (token_tile, d_ffwd_tile) grid step.

    grid = (token tiles [parallel], d_ffwd tiles [arbitrary / reduction]).
    acc_ref: f32 VMEM accumulator (tm, d_model_padded), resident across the
    d_ffwd axis because the output block index is constant in f.
    """
    f = pl.program_id(1)

    @pl.when(f == 0)
    def _():
        acc_ref[...] = jnp.zeros_like(acc_ref)

    # hidden tile: relu(x @ W1[:, f_tile] + b1[f_tile]) in f32.
    h = jnp.dot(x_ref[...], w1_ref[...], preferred_element_type=jnp.float32)
    h = jnp.maximum(h + b1_ref[...], 0.0)

    # partial contribution of this d_ffwd tile to the output.
    acc_ref[...] += jnp.dot(h.astype(w2_ref.dtype), w2_ref[...],
                            preferred_element_type=jnp.float32)

    @pl.when(f == pl.num_programs(1) - 1)
    def _():
        o_ref[...] = (acc_ref[...] + b2_ref[...]).astype(o_ref.dtype)


def ffw_network(x, w1, b1, w2, b2, *, tm=256, tf=512,
                compute_dtype=jnp.bfloat16):
    """x: (B, S, d_model); w1: (d_model, d_ffwd); w2: (d_ffwd, d_model).

    Weights are the pre-transposed nn.Linear weights (in_features, out_features),
    so the kernel computes plain row-major matmuls on the MXU.
    """
    B, S, d_model = x.shape
    d_ffwd = w1.shape[1]
    tokens = B * S
    out_dtype = x.dtype

    # ---- padded / tiled dimensions (lane-dense: last dims multiples of 128) ----
    dm_p = _round_up(d_model, 128)
    tf = _round_up(tf, 128)
    tf_eff = min(tf, _round_up(d_ffwd, 128))
    df_p = _round_up(d_ffwd, tf_eff)

    tm_eff = min(_round_up(tm, 8), _round_up(tokens, 8))
    tokens_p = _round_up(tokens, tm_eff)

    # ---- pad + cast inputs (zero padding is exact: padded rows/cols contribute 0) ----
    x2d = _pad2d(x.reshape(tokens, d_model), tokens_p, dm_p).astype(compute_dtype)
    w1_p = _pad2d(w1, dm_p, df_p).astype(compute_dtype)
    w2_p = _pad2d(w2, df_p, dm_p).astype(compute_dtype)
    b1_p = _pad2d(b1.reshape(1, d_ffwd), 1, df_p).astype(jnp.float32)
    b2_p = _pad2d(b2.reshape(1, d_model), 1, dm_p).astype(jnp.float32)

    grid = (tokens_p // tm_eff, df_p // tf_eff)

    itemsize = jnp.dtype(compute_dtype).itemsize
    cost = pl.CostEstimate(
        flops=4 * tokens_p * dm_p * df_p,          # two matmuls, 2*M*K*N each
        transcendentals=0,
        bytes_accessed=(x2d.size + w1_p.size + w2_p.size) * itemsize
        + (b1_p.size + b2_p.size) * 4
        + tokens_p * dm_p * jnp.dtype(out_dtype).itemsize,
    )

    out_p = pl.pallas_call(
        ffw_kernel,
        out_shape=jax.ShapeDtypeStruct((tokens_p, dm_p), out_dtype),
        grid_spec=pltpu.PrefetchScalarGridSpec(
            num_scalar_prefetch=0,
            grid=grid,
            in_specs=[
                pl.BlockSpec((tm_eff, dm_p), lambda i, f: (i, 0)),    # x tile
                pl.BlockSpec((dm_p, tf_eff), lambda i, f: (0, f)),    # W1 tile
                pl.BlockSpec((1, tf_eff), lambda i, f: (0, f)),       # b1 tile
                pl.BlockSpec((tf_eff, dm_p), lambda i, f: (f, 0)),    # W2 tile
                pl.BlockSpec((1, dm_p), lambda i, f: (0, 0)),         # b2
            ],
            out_specs=pl.BlockSpec((tm_eff, dm_p), lambda i, f: (i, 0)),
            scratch_shapes=[pltpu.VMEM((tm_eff, dm_p), jnp.float32)],
        ),
        compiler_params=pltpu.CompilerParams(
            dimension_semantics=("parallel", "arbitrary"),
            vmem_limit_bytes=64 * 1024 * 1024,
        ),
        cost_estimate=cost,
    )(x2d, w1_p, b1_p, w2_p, b2_p)

    return out_p[:tokens, :d_model].reshape(B, S, d_model)


if __name__ == "__main__":
    # Small shapes consistent with the module's forward.
    B, S = 2, 8
    d_model, d_ffwd = 128, 256

    key = jax.random.PRNGKey(0)
    kx, kw1, kb1, kw2, kb2 = jax.random.split(key, 5)

    x = jax.random.normal(kx, (B, S, d_model), dtype=jnp.float32)

    # PyTorch nn.Linear-style init: U(-1/sqrt(in), 1/sqrt(in)); stored transposed.
    lim1 = 1.0 / (d_model ** 0.5)
    w1 = jax.random.uniform(kw1, (d_model, d_ffwd), jnp.float32, -lim1, lim1)
    b1 = jax.random.uniform(kb1, (d_ffwd,), jnp.float32, -lim1, lim1)
    lim2 = 1.0 / (d_ffwd ** 0.5)
    w2 = jax.random.uniform(kw2, (d_ffwd, d_model), jnp.float32, -lim2, lim2)
    b2 = jax.random.uniform(kb2, (d_model,), jnp.float32, -lim2, lim2)

    # tf=128 so the demo exercises the d_ffwd reduction axis (2 grid steps).
    out = ffw_network(x, w1, b1, w2, b2, tf=128)
    jax.block_until_ready(out)

    # Pure-JAX f32 reference of the same forward semantics.
    ref = jnp.maximum(x @ w1 + b1, 0.0) @ w2 + b2
    assert out.shape == (B, S, d_model)
    # bf16 matmul operands with f32 accumulation -> tolerance vs the f32 reference.
    assert jnp.allclose(out, ref, atol=5e-2, rtol=5e-2), float(
        jnp.max(jnp.abs(out - ref)))

    print("KERNEL_OK")
</pallas_src>

<mosaic_0001>
module attributes {stable_mosaic.version = 11 : i64} {
  func.func @ffw_kernel(%arg0: i32, %arg1: i32, %arg2: memref<16x128xbf16, #tpu.memory_space<vmem>>, %arg3: memref<128x128xbf16, #tpu.memory_space<vmem>>, %arg4: memref<1x128xf32, #tpu.memory_space<vmem>>, %arg5: memref<128x128xbf16, #tpu.memory_space<vmem>>, %arg6: memref<1x128xf32, #tpu.memory_space<vmem>>, %arg7: memref<16x128xf32, #tpu.memory_space<vmem>>, %arg8: memref<16x128xf32, #tpu.memory_space<vmem>>) attributes {dimension_semantics = [#tpu.dimension_semantics<parallel>, #tpu.dimension_semantics<arbitrary>], iteration_bounds = array<i64: 1, 2>, scalar_prefetch = 0 : i64, scratch_operands = 1 : i64, tpu.core_type = #tpu.core_type<tc>, window_params = [{transform_indices = @transform_0, window_bounds = array<i64: 16, 128>}, {transform_indices = @transform_1, window_bounds = array<i64: 128, 128>}, {transform_indices = @transform_2, window_bounds = array<i64: 1, 128>}, {transform_indices = @transform_3, window_bounds = array<i64: 128, 128>}, {pipeline_mode = #tpu.pipeline_mode<synchronous>, transform_indices = @transform_4, window_bounds = array<i64: 1, 128>}, {transform_indices = @transform_5, window_bounds = array<i64: 16, 128>}]} {
    %c0_i32 = arith.constant 0 : i32
    %0 = arith.cmpi eq, %arg1, %c0_i32 : i32
    %1 = arith.extui %0 : i1 to i32
    %c0_i32_0 = arith.constant 0 : i32
    %2 = arith.cmpi ne, %1, %c0_i32_0 : i32
    scf.if %2 {
      %cst_15 = arith.constant 0.000000e+00 : f32
      %20 = vector.broadcast %cst_15 : f32 to vector<16x128xf32>
      %c0_16 = arith.constant 0 : index
      %c0_17 = arith.constant 0 : index
      %21 = vector.load %arg8[%c0_16, %c0_17] : memref<16x128xf32, #tpu.memory_space<vmem>>, vector<16x128xf32>
      tpu.vector_store %arg8[%c0_16, %c0_17], %20 {strides = array<i32>} : memref<16x128xf32, #tpu.memory_space<vmem>>, vector<16x128xf32>,
    } else {
    }
    %c0 = arith.constant 0 : index
    %c0_1 = arith.constant 0 : index
    %3 = vector.load %arg2[%c0, %c0_1] : memref<16x128xbf16, #tpu.memory_space<vmem>>, vector<16x128xbf16>
    %c0_2 = arith.constant 0 : index
    %c0_3 = arith.constant 0 : index
    %4 = vector.load %arg3[%c0_2, %c0_3] : memref<128x128xbf16, #tpu.memory_space<vmem>>, vector<128x128xbf16>
    %cst = arith.constant dense<0.000000e+00> : vector<16x128xf32>
    %5 = tpu.matmul %3, %4, %cst {dimension_numbers = #tpu.dot_dimension_numbers<[1], [0], [0], [1], [0, 0, 1, 1], [], []>} : vector<16x128xbf16>, vector<128x128xbf16>, vector<16x128xf32> -> vector<16x128xf32>
    %c0_4 = arith.constant 0 : index
    %c0_5 = arith.constant 0 : index
    %6 = vector.load %arg4[%c0_4, %c0_5] : memref<1x128xf32, #tpu.memory_space<vmem>>, vector<1x128xf32>
    %7 = vector.broadcast %6 : vector<1x128xf32> to vector<16x128xf32>
    %8 = arith.addf %5, %7 : vector<16x128xf32>
    %cst_6 = arith.constant 0.000000e+00 : f32
    %9 = vector.broadcast %cst_6 : f32 to vector<16x128xf32>
    %10 = arith.maximumf %8, %9 : vector<16x128xf32>
    %c0_7 = arith.constant 0 : index
    %c0_8 = arith.constant 0 : index
    %11 = vector.load %arg8[%c0_7, %c0_8] : memref<16x128xf32, #tpu.memory_space<vmem>>, vector<16x128xf32>
    %12 = arith.truncf %10 : vector<16x128xf32> to vector<16x128xbf16>
    %c0_9 = arith.constant 0 : index
    %c0_10 = arith.constant 0 : index
    %13 = vector.load %arg5[%c0_9, %c0_10] : memref<128x128xbf16, #tpu.memory_space<vmem>>, vector<128x128xbf16>
    %cst_11 = arith.constant dense<0.000000e+00> : vector<16x128xf32>
    %14 = tpu.matmul %12, %13, %cst_11 {dimension_numbers = #tpu.dot_dimension_numbers<[1], [0], [0], [1], [0, 0, 1, 1], [], []>} : vector<16x128xbf16>, vector<128x128xbf16>, vector<16x128xf32> -> vector<16x128xf32>
    %15 = arith.addf %11, %14 : vector<16x128xf32>
    %c0_12 = arith.constant 0 : index
    %c0_13 = arith.constant 0 : index
    %16 = vector.load %arg8[%c0_12, %c0_13] : memref<16x128xf32, #tpu.memory_space<vmem>>, vector<16x128xf32>
    tpu.vector_store %arg8[%c0_12, %c0_13], %15 {strides = array<i32>} : memref<16x128xf32, #tpu.memory_space<vmem>>, vector<16x128xf32>,
    %c1_i32 = arith.constant 1 : i32
    %17 = arith.cmpi eq, %arg1, %c1_i32 : i32
    %18 = arith.extui %17 : i1 to i32
    %c0_i32_14 = arith.constant 0 : i32
    %19 = arith.cmpi ne, %18, %c0_i32_14 : i32
    scf.if %19 {
      %c0_15 = arith.constant 0 : index
      %c0_16 = arith.constant 0 : index
      %20 = vector.load %arg8[%c0_15, %c0_16] : memref<16x128xf32, #tpu.memory_space<vmem>>, vector<16x128xf32>
      %c0_17 = arith.constant 0 : index
      %c0_18 = arith.constant 0 : index
      %21 = vector.load %arg6[%c0_17, %c0_18] : memref<1x128xf32, #tpu.memory_space<vmem>>, vector<1x128xf32>
      %22 = vector.broadcast %21 : vector<1x128xf32> to vector<16x128xf32>
      %23 = arith.addf %20, %22 : vector<16x128xf32>
      %c0_19 = arith.constant 0 : index
      %c0_20 = arith.constant 0 : index
      %24 = vector.load %arg7[%c0_19, %c0_20] : memref<16x128xf32, #tpu.memory_space<vmem>>, vector<16x128xf32>
      tpu.vector_store %arg7[%c0_19, %c0_20], %23 {strides = array<i32>} : memref<16x128xf32, #tpu.memory_space<vmem>>, vector<16x128xf32>,
    } else {
    }
    return
  }
  func.func @transform_0(%arg0: i32, %arg1: i32) -> (i32, i32) {
    %c0_i32 = arith.constant 0 : i32
    %c0_i32_0 = arith.constant 0 : i32
    return %arg0, %c0_i32 : i32, i32
  }
  func.func @transform_1(%arg0: i32, %arg1: i32) -> (i32, i32) {
    %c0_i32 = arith.constant 0 : i32
    %c0_i32_0 = arith.constant 0 : i32
    return %c0_i32, %arg1 : i32, i32
  }
  func.func @transform_2(%arg0: i32, %arg1: i32) -> (i32, i32) {
    %c0_i32 = arith.constant 0 : i32
    %c0_i32_0 = arith.constant 0 : i32
    return %c0_i32, %arg1 : i32, i32
  }
  func.func @transform_3(%arg0: i32, %arg1: i32) -> (i32, i32) {
    %c0_i32 = arith.constant 0 : i32
    %c0_i32_0 = arith.constant 0 : i32
    return %arg1, %c0_i32 : i32, i32
  }
  func.func @transform_4(%arg0: i32, %arg1: i32) -> (i32, i32) {
    %c0_i32 = arith.constant 0 : i32
    %c0_i32_0 = arith.constant 0 : i32
    %c0_i32_1 = arith.constant 0 : i32
    return %c0_i32, %c0_i32_0 : i32, i32
  }
  func.func @transform_5(%arg0: i32, %arg1: i32) -> (i32, i32) {
    %c0_i32 = arith.constant 0 : i32
    %c0_i32_0 = arith.constant 0 : i32
    return %arg0, %c0_i32 : i32, i32
  }
}

</mosaic_0001>

<bundles_post_ra>
// kernel: tpu_custom_call.1
= control target key start
LH: loop header
LB: loop body
LE: loop exit
PB: predicated region body
PF: predicated region fallthrough
CT: control target
= control target key end

     0   :  { %s1561_s0 = inlined_call_operand.hbm [shape: bf16[16,128], index: 0, kind: input, shape index: {}]   ;;  %s1562_s1 = inlined_call_operand.hbm [shape: bf16[128,256], index: 1, kind: input, shape index: {}]   ;;  %s1563_s2 = inlined_call_operand.hbm [shape: f32[1,256], index: 2, kind: input, shape index: {}]   ;;  %s1564_s3 = inlined_call_operand.hbm [shape: bf16[256,128], index: 3, kind: input, shape index: {}]   ;;  %s1565_s4 = inlined_call_operand.hbm [shape: f32[1,128], index: 4, kind: input, shape index: {}]   ;;  %s1566_s5 = inlined_call_operand.hbm [shape: f32[16,128], index: 5, kind: output, shape index: {}]  }
   0x1   :  { %1580 = sst [smem:[#allocation20_spill]] %s1562_s1 }
   0x2   :  { %1581 = sst [smem:[#allocation21_spill]] %s1565_s4 }
   0x3   :  { %10 = vsyncpa [#allocation4], 0 }
   0x4   :  { %11 = vsyncpa [#allocation7], 0 }
   0x5   :  { %13 = vsyncpa [#allocation7 + $0x1], 0 }
   0x6   :  { %14 = vsyncpa [#allocation10], 0 }
   0x7   :  { %16 = vsyncpa [#allocation10 + $0x1], 0 }
   0x8   :  { %17 = vsyncpa [#allocation5], 0  ;;  %s1252_s18 = smov 0   ;;  %s1254_s19 = smov 0  }
   0x9   :  { %s1256_s20 = smov 0   ;;  %s1258_s21 = smov 0  }
   0xa   :  { %s1260_s22 = smov 0   ;;  %s1262_s23 = smov 0  }
   0xb LB: > { %s1281_s24 = sadd.s32 4294967295, %s1206_s23   ;;  %s68_s25 = sadd.s32 1, %s1194_s20  ;;  %s1206_s23 = sphi %s1262_s23, %s23_s23   ;;  %s1202_s22 = sphi %s1260_s22, %s1611_s22   ;;  %s1198_s21 = sphi %s1258_s21, %s1610_s21   ;;  %s1194_s20 = sphi %s1256_s20, %s1609_s20   ;;  %s1190_s19 = sphi %s1254_s19, %s1608_s19   ;;  %s1186_s18 = sphi %s1252_s18, %s1607_s18  }
   0xc   : > { %p75_p0 = scmp.ne.s32.totalorder %s1194_s20, %s1190_s19  ;;  %p76_p1 = scmp.eq.s32.totalorder %s1206_s23, 0 }
   0xd   : > { %p81_p2 = scmp.ne.s32.totalorder %s1190_s19, %s1186_s18  ;;  %p1567_p3 = scmp.eq.s32.totalorder %s1281_s24, 0 }
   0xe   : > { %p77_p4 = por %p76_p1, %p75_p0  ;;  %p751_p5 = scmp.ge.s32.totalorder %s1206_s23, 1 }
   0xf   : > { %p1292_p6 = por %p1567_p3, %p81_p2  ;;  %p191_p7 = scmp.lt.s32.totalorder %s1206_s23, 3 }
  0x10   : > { %s1208_s28 = smov [#allocation11]   ;;  %p887_p10 = scmp.lt.s32.totalorder %s1206_s23, 2 }
  0x11   : > { %s1582_s26 = scalar_select %p1292_p6, 1, 0 }
  0x12   : > { %p1297_p8 = pnand %p751_p5, %p191_p7  ;;  %s220_s29 = sshll.u32 %s1208_s28, 4  ;;  %s221_s29 = int_to_ptr.vmem [resolvable:$true] %s220_s29 }
  0x13   : > { %p1310_p12 = pnand %p887_p10, %p77_p4  ;;  %s1586_s4 = sld [smem:[#allocation21_spill]] }
  0x14   : > { %s1583_s27 = scalar_select %p1297_p8, 1, 0 }
  0x15   : > { %p868_p9 = pneg %p1297_p8 }
  0x16   : > { %s1585_s6 = scalar_select %p1310_p12, 1, 0 }
  0x17   : > { %p1306_p11 = pnand %p868_p9, %p1567_p3 }
  0x19   : > { %s1584_s30 = scalar_select %p1306_p11, 1, 0 }
  0x1a   : > { %s968_s9 = scalar_lea.hbm %s1586_s4, 16  ;;  %p1572_p0 = pneg %p1306_p11 }
  0x1b   : > { %p969_p13 = scmp.ne.s32.totalorder %s1586_s4, %s968_s9  ;;  %p975_p4 = scmp.lt.u32.totalorder %s968_s9, %s1586_s4 }
  0x1d   : > { %p971_p1 = pnand %p1572_p0, %p969_p13 }
  0x1f   : > { %p972_p2 = pneg %p971_p1 }
  0x21   : > { %p977_p5 = pnand %p975_p4, %p972_p2 }
  0x23   : > { %980 = shalt.err (!%p977_p5)
}
  0x24   : > { %s981_s14 = scalar_lea.vmem %s221_s29, 16  ;;  %s988_s15 = scalar_lea.vmem %s221_s29, 32 }
  0x25   : > { %p982_p7 = scmp.ne.s32.totalorder %s221_s29, %s981_s14  ;;  %p989_p3 = scmp.lt.s32.totalorder %s221_s29, %s221_s29 }
  0x26   : > { %p990_p6 = scmp.lt.s32.totalorder %s988_s15, %s981_s14 }
  0x27   : > { %p984_p9 = pnand %p982_p7, %p1572_p0 }
  0x28   : > { %p991_p8 = por %p990_p6, %p989_p3 }
  0x29   : > { %p985_p10 = pneg %p984_p9 }
  0x2b   : > { %p992_p12 = pnand %p991_p8, %p985_p10 }
  0x2d   : > { %995 = shalt.err (!%p992_p12)
}
  0x2e   : > { %874 = dma.hbm_to_vmem [thread:$0]  (!%p1306_p11), %s1586_s4, 16, %s221_s29, [#allocation10]  }
  0x2f   : > { %s32_s18 = sadd.s32 1, %s1202_s22  ;;  %s1571_s28 = sand.u32 1, %s1206_s23  }
  0x30   : > { %p33_p3 = scmp.ge.s32.totalorder %s32_s18, 2  ;;  %s1575_s7 = sand.u32 1, %s1194_s20  }
  0x31   : > { %s756_s8 = sshll.u32 %s1202_s22, 6  ;;  %s1344_s9 = sshll.u32 %s1575_s7, 6 }
  0x32   : > { %s1613_s18 = smov (%p33_p3, %s32_s18), 0  ;;  %s1588_s1 = sld [smem:[#allocation20_spill]] }
  0x33   : > { %1587 = sst [smem:[#allocation18_spill]] %s1613_s18  ;;  %s65_s29 = ssub.s32 %s1202_s22, %s1613_s18 }
  0x34   : > { %p66_p6 = scmp.eq.s32.totalorder %s65_s29, 0  ;;  %s235_s13 = scalar_lea.vmem [#allocation6], %s1344_s9 }
  0x35   : > { %s241_s14 = sshll.u32 %s235_s13, 4  ;;  %s1363_s16 = scalar_lea.sflag [#allocation7], %s1571_s28  ;;  %s1354_s14 = int_to_ptr.vmem [resolvable:$true] %s241_s14 }
  0x36   : > { %s1359_s15 = scalar_select %p66_p6, %s1194_s20, %s68_s25  }
  0x37   : > { %p1590_p12 = scmp.ne.s32.totalorder %s1585_s6, 0 }
  0x38   : > { %s1349_s12 = scalar_lea.hbm %s1588_s1, %s756_s8  ;;  %1589 = sst [smem:[#allocation19_spill]] %s1359_s15 }
  0x39   : > { %s996_s17 = scalar_lea.hbm %s1349_s12, 1024  ;;  %p1369_p13 = pneg %p1590_p12 }
  0x3a   : > { %p997_p8 = scmp.ne.s32.totalorder %s1349_s12, %s996_s17  ;;  %s1001_s29 = scalar_lea.hbm %s1588_s1, 2048 }
  0x3b   : > { %s1591_s8 = scalar_select %p1369_p13, 1, 0 }
  0x3c   : > { %p999_p1 = pnand %p1369_p13, %p997_p8  ;;  %p1002_p4 = scmp.lt.u32.totalorder %s1349_s12, %s1588_s1 }
  0x3d   : > { %p1003_p5 = scmp.lt.u32.totalorder %s1001_s29, %s996_s17  ;;  %p1005_p9 = scmp.lt.u32.totalorder %s996_s17, %s1349_s12 }
  0x3e   : > { %p1000_p2 = pneg %p999_p1 }
  0x3f   : > { %p1004_p7 = por %p1003_p5, %p1002_p4 }
  0x41   : > { %p1006_p10 = por %p1005_p9, %p1004_p7 }
  0x43   : > { %p1007_p3 = pnand %p1006_p10, %p1000_p2 }
  0x45   : > { %1010 = shalt.err (!%p1007_p3)
}
  0x46   : > { %s1011_s28 = scalar_lea.vmem %s1354_s14, 1024  ;;  %s1209_s10 = smov [#allocation6]  }
  0x47   : > { %p1012_p6 = scmp.ne.s32.totalorder %s1354_s14, %s1011_s28  ;;  %s1016_s11 = sshll.u32 %s1209_s10, 4  ;;  %s1017_s11 = int_to_ptr.vmem [resolvable:$false] %s1016_s11 }
  0x48   : > { %s1018_s25 = scalar_lea.vmem %s1017_s11, 2048  ;;  %p1019_p0 = scmp.lt.s32.totalorder %s1354_s14, %s1017_s11 }
  0x49   : > { %p1014_p8 = pnand %p1012_p6, %p1369_p13  ;;  %p1020_p11 = scmp.lt.s32.totalorder %s1018_s25, %s1011_s28 }
  0x4b   : > { %p1015_p1 = pneg %p1014_p8  ;;  %p1021_p4 = por %p1020_p11, %p1019_p0 }
  0x4d   : > { %p1022_p5 = pnand %p1021_p4, %p1015_p1 }
  0x4f   : > { %1025 = shalt.err (!%p1022_p5)
}
  0x50   : > { %s1210_s17 = smov 128   ;;  %s1211_s29 = smov 64  }
  0x51   : > { %s1212_s13 = smov 4   ;;  %s1213_s10 = smov [#allocation3]  }
  0x52   : > { %878 = dma.hbm_to_vmem [thread:$0]  (!%p1590_p12), %s1349_s12, 1024, %s1354_s14, %s1363_s16, %s1210_s17, %s1211_s29, %s1212_s13  }
  0x53   : > { %s206_s7 = sshll.u32 %s1213_s10, 4  ;;  %s1026_s25 = scalar_lea.hbm %s1561_s0, 128  ;;  %s207_s7 = int_to_ptr.vmem [resolvable:$true] %s206_s7 }
  0x54   : > { %p1027_p11 = scmp.ne.s32.totalorder %s1561_s0, %s1026_s25  ;;  %p1592_p0 = scmp.ne.s32.totalorder %s1584_s30, 0 }
  0x55   : > { %p1033_p10 = scmp.lt.u32.totalorder %s1026_s25, %s1561_s0 }
  0x56   : > { %p1593_p2 = pneg %p1592_p0 }
  0x58   : > { %p1029_p7 = pnand %p1027_p11, %p1593_p2 }
  0x5a   : > { %p1030_p9 = pneg %p1029_p7 }
  0x5c   : > { %p1035_p3 = pnand %p1033_p10, %p1030_p9 }
  0x5e   : > { %1038 = shalt.err (!%p1035_p3)
}
  0x5f   : > { %s1039_s12 = scalar_lea.vmem %s207_s7, 128  ;;  %p1594_p8 = pmov %p1593_p2 }
  0x60   : > { %p1040_p6 = scmp.ne.s32.totalorder %s207_s7, %s1039_s12  ;;  %p1047_p5 = scmp.lt.s32.totalorder %s207_s7, %s207_s7 }
  0x61   : > { %p1048_p12 = scmp.lt.s32.totalorder %s1039_s12, %s1039_s12 }
  0x62   : > { %p1042_p1 = pnand %p1040_p6, %p1594_p8 }
  0x63   : > { %p1049_p13 = por %p1048_p12, %p1047_p5 }
  0x64   : > { %p1043_p4 = pneg %p1042_p1 }
  0x66   : > { %p1050_p2 = pnand %p1049_p13, %p1043_p4 }
  0x68   : > { %1053 = shalt.err (!%p1050_p2)
}
  0x69   : > { %871 = dma.hbm_to_vmem [thread:$0]  (!%p1592_p0), %s1561_s0, 128, %s207_s7, [#allocation4], %s1211_s29, %s1211_s29, %s1212_s13  }
  0x6a   : > { %s757_s18 = sshll.u32 %s1202_s22, 4  ;;  %s1595_s14 = sand.u32 1, %s1194_s20  }
  0x6b   : > { %s254_s15 = scalar_lea.vmem [#allocation8], %s1595_s14  ;;  %s259_s28 = scalar_lea.hbm %s1563_s2, %s757_s18 }
  0x6c   : > { %s261_s17 = sshll.u32 %s254_s15, 4  ;;  %s1054_s30 = scalar_lea.hbm %s259_s28, 16  ;;  %s262_s17 = int_to_ptr.vmem [resolvable:$true] %s261_s17 }
  0x6d   : > { %p1055_p12 = scmp.ne.s32.totalorder %s259_s28, %s1054_s30  ;;  %p1596_p13 = scmp.ne.s32.totalorder %s1591_s8, 0 }
  0x6e   : > { %s1059_s1 = scalar_lea.hbm %s1563_s2, 32  ;;  %p1060_p0 = scmp.lt.u32.totalorder %s259_s28, %s1563_s2 }
  0x6f   : > { %p1057_p11 = pnand %p1055_p12, %p1596_p13  ;;  %p1061_p9 = scmp.lt.u32.totalorder %s1059_s1, %s1054_s30 }
  0x70   : > { %p1063_p3 = scmp.lt.u32.totalorder %s1054_s30, %s259_s28 }
  0x71   : > { %p1058_p7 = pneg %p1057_p11  ;;  %p1062_p10 = por %p1061_p9, %p1060_p0 }
  0x73   : > { %p1064_p6 = por %p1063_p3, %p1062_p10 }
  0x75   : > { %p1065_p8 = pnand %p1064_p6, %p1058_p7 }
  0x77   : > { %1068 = shalt.err (!%p1065_p8)
}
  0x78   : > { %s1069_s18 = scalar_lea.vmem %s262_s17, 16  ;;  %s1214_s14 = smov [#allocation8]  }
  0x79   : > { %p1070_p1 = scmp.ne.s32.totalorder %s262_s17, %s1069_s18  ;;  %s1074_s15 = sshll.u32 %s1214_s14, 4  ;;  %s1075_s15 = int_to_ptr.vmem [resolvable:$false] %s1074_s15 }
  0x7a   : > { %s1076_s10 = scalar_lea.vmem %s1075_s15, 32  ;;  %p1077_p2 = scmp.lt.s32.totalorder %s262_s17, %s1075_s15 }
  0x7b   : > { %p1072_p4 = pnand %p1070_p1, %p1596_p13  ;;  %p1078_p12 = scmp.lt.s32.totalorder %s1076_s10, %s1069_s18 }
  0x7d   : > { %p1073_p5 = pneg %p1072_p4  ;;  %p1079_p11 = por %p1078_p12, %p1077_p2 }
  0x7f   : > { %p1080_p0 = pnand %p1079_p11, %p1073_p5 }
  0x81   : > { %1083 = shalt.err (!%p1080_p0)
}
  0x82   : > { %p1597_p9 = scmp.ne.s32.totalorder %s1585_s6, 0  ;;  %s791_s11 = sshll.u32 %s1202_s22, 10 }
  0x83   : > { %s272_s30 = scalar_lea.vmem [#allocation9], %s1344_s9  ;;  %s1442_s4 = scalar_lea.hbm %s1564_s3, %s791_s11 }
  0x84   : > { %881 = dma.hbm_to_vmem [thread:$0]  (!%p1597_p9), %s259_s28, 16, %s262_s17, %s1363_s16  }
  0x85   : > { %s279_s25 = sshll.u32 %s272_s30, 4  ;;  %s1598_s7 = sand.u32 1, %s1206_s23   ;;  %s1444_s25 = int_to_ptr.vmem [resolvable:$true] %s279_s25 }
  0x86   : > { %s1448_s18 = scalar_lea.sflag [#allocation10], %s1598_s7  ;;  %s1084_s14 = scalar_lea.hbm %s1442_s4, 1024 }
  0x87   : > { %p1085_p7 = scmp.ne.s32.totalorder %s1442_s4, %s1084_s14  ;;  %s1089_s17 = scalar_lea.hbm %s1564_s3, 2048 }
  0x88   : > { %p1090_p6 = scmp.lt.u32.totalorder %s1442_s4, %s1564_s3  ;;  %p1091_p8 = scmp.lt.u32.totalorder %s1089_s17, %s1084_s14 }
  0x89   : > { %p1087_p10 = pnand %p1085_p7, %p1596_p13  ;;  %p1093_p4 = scmp.lt.u32.totalorder %s1084_s14, %s1442_s4 }
  0x8a   : > { %p1092_p1 = por %p1091_p8, %p1090_p6 }
  0x8b   : > { %p1088_p3 = pneg %p1087_p10 }
  0x8c   : > { %p1094_p5 = por %p1093_p4, %p1092_p1 }
  0x8e   : > { %p1095_p2 = pnand %p1094_p5, %p1088_p3 }
  0x90   : > { %1098 = shalt.err (!%p1095_p2)
}
  0x91   : > { %s1099_s10 = scalar_lea.vmem %s1444_s25, 1024  ;;  %s1215_s11 = smov [#allocation9]  }
  0x92   : > { %p1100_p12 = scmp.ne.s32.totalorder %s1444_s25, %s1099_s10  ;;  %s1104_s30 = sshll.u32 %s1215_s11, 4  ;;  %s1105_s30 = int_to_ptr.vmem [resolvable:$false] %s1104_s30 }
  0x93   : > { %s1106_s12 = scalar_lea.vmem %s1105_s30, 2048  ;;  %p1107_p7 = scmp.lt.s32.totalorder %s1444_s25, %s1105_s30 }
  0x94   : > { %p1102_p11 = pnand %p1100_p12, %p1596_p13  ;;  %p1108_p10 = scmp.lt.s32.totalorder %s1106_s12, %s1099_s10 }
  0x96   : > { %p1103_p0 = pneg %p1102_p11  ;;  %p1109_p6 = por %p1108_p10, %p1107_p7 }
  0x98   : > { %p1110_p8 = pnand %p1109_p6, %p1103_p0 }
  0x9a   : > { %1113 = shalt.err (!%p1110_p8)
}
  0x9b   : > { %884 = dma.hbm_to_vmem [thread:$0]  (!%p1597_p9), %s1442_s4, 1024, %s1444_s25, %s1448_s18, %s1211_s29, %s1211_s29, %s1212_s13  }
  0x9c   : > { %p1599_p13 = scmp.ne.s32.totalorder %s1583_s27, 0 }
  0x9d   : > { %p1600_p3 = scmp.eq.s32.totalorder (!%p1599_p13), %s1281_s24, 0 }
  0x9e   : > { %291 = sbr.rel (%p1599_p13) target bundleno = 692 (0x2b4), region = 40 }
  0xa5   : > { %1165 = dma.done.wait (%p1600_p3), [#allocation4], 128   ;;  %p1601_p1 = pmov %p1600_p3 }
  0xa6   : > { %s297_s6 = sand.u32 1, %s1281_s24   ;;  %s299_s8 = sand.u32 1, %s1190_s19  }
  0xa7   : > { %1167 = vsyncadd (%p1601_p1), [#allocation4], 4294967168  ;;  %s763_s1 = sshll.u32 %s299_s8, 6  ;;  %s298_s7 = scalar_lea.sflag [#allocation7], %s297_s6 }
  0xa8   : > { %s1483_s14 = scalar_lea.vmem [#allocation6], %s763_s1  ;;  %p1602_p4 = scmp.ne.s32.totalorder %s1582_s26, 0 }
  0xaa   : > { %1169 = dma.done.wait (%p1602_p4), %s298_s7, 1040  }
  0xab   : > { %1171 = vsyncadd (%p1602_p4), %s298_s7, 4294966256  ;;  %s1489_s27 = scalar_lea.vmem [#allocation8], %s299_s8  ;;  %s315_s29 = scalar_lea.sflag [#allocation10], %s297_s6 }
  0xac   : > { %s1491_s13 = scalar_lea.vmem [#allocation9], %s763_s1 }
  0xad   : > { %1173 = dma.done.wait (%p1602_p4), %s315_s29, 1024  }
  0xae   : > { %1175 = vsyncadd (%p1602_p4), %s315_s29, 4294966272  ;;  %p1603_p9 = pmov %p1601_p1 }
  0xaf   : > { %p1604_p5 = pmov %p1601_p1 }
  0xb0   : > { %1177 = dma.done.wait (%p1603_p9), [#allocation10], 16  }
  0xb1   : > { %1179 = vsyncadd (%p1604_p5), [#allocation10], 4294967280  ;;  %p766_p2 = scmp.ne.s32.totalorder %s1198_s21, 0 }
  0xb2   : > { %v1216_v0 = vmov (!%p766_p2), 0.0  }
  0xb3   : > { %360 = sbr.rel (%p766_p2) target bundleno = 186 (0xba), region = 64  ;;  %361 = vst [vmem:[#allocation2] sm:$0xff] (!%p766_p2), %v1216_v0  ;;  %362 = vst [vmem:[#allocation2 + $0x8] sm:$0xff] (!%p766_p2), %v1216_v0 }
  0xba PF: > { %v951_v1 = vld [vmem:[%s1483_s14] sm:$0xff]   ;;  %v1217_v2 = vmov 0.0   ;;  %v952_v3 = vld [vmem:[%s1483_s14 + $0x8] sm:$0xff]   ;;  %vm1218_vm0 = vmmov 0   ;;  %v953_v4 = vld [vmem:[%s1483_s14 + $0x10] sm:$0xff]   ;;  %p785_p12 = scmp.ne.s32.totalorder %s1198_s21, 1 }
  0xbb   : > { %810 = vmatprep.subr.bf16.mxu0 %v1217_v2  ;;  %830 = vmatprep.subr.bf16.mxu1 %v1217_v2  ;;  %v960_v5 = vld [vmem:[%s1491_s13] sm:$0xff]   ;;  %v954_v6 = vld [vmem:[%s1483_s14 + $0x18] sm:$0xff]   ;;  %v961_v7 = vld [vmem:[%s1491_s13 + $0x8] sm:$0xff]  }
  0xbc   : > { %811 = vmatpush3.bf16.msra.mxu0 %v951_v1  ;;  %826 = vmatprep.mubr.msk.bf16.mxu0 %vm1218_vm0, %v1217_v2  ;;  %v955_v8 = vld [vmem:[%s1483_s14 + $0x20] sm:$0xff]   ;;  %v962_v9 = vld [vmem:[%s1491_s13 + $0x10] sm:$0xff]   ;;  %v956_v10 = vld [vmem:[%s1483_s14 + $0x28] sm:$0xff]  }
  0xbd   : > { %812 = vmatprep.subr.bf16.mxu0 %v1217_v2  ;;  %846 = vmatprep.mubr.msk.bf16.mxu1 %vm1218_vm0, %v1217_v2  ;;  %v963_v11 = vld [vmem:[%s1491_s13 + $0x18] sm:$0xff]   ;;  %v957_v12 = vld [vmem:[%s1483_s14 + $0x30] sm:$0xff]   ;;  %v964_v13 = vld [vmem:[%s1491_s13 + $0x20] sm:$0xff]  }
  0xbe   : > { %831 = vmatpush3.bf16.msra.mxu1 %v960_v5  ;;  %v958_v14 = vld [vmem:[%s1483_s14 + $0x38] sm:$0xff]   ;;  %v965_v15 = vld [vmem:[%s1491_s13 + $0x28] sm:$0xff]   ;;  %v767_v19 = vld [vmem:[%s1489_s27] ss:$0 sm:$0xff] }
  0xbf   : > { %832 = vmatprep.subr.bf16.mxu1 %v1217_v2  ;;  %v959_v16 = vld [vmem:[#allocation3] sm:$0xff]   ;;  %v485_v29 = vld [vmem:[#allocation2] sm:$0xff]  ;;  %v486_v31 = vld [vmem:[#allocation2 + $0x8] sm:$0xff] }
  0xc0   : > { %813 = vmatpush3.bf16.msra.mxu0 %v952_v3  ;;  %v966_v17 = vld [vmem:[%s1491_s13 + $0x30] sm:$0xff]   ;;  %v967_v18 = vld [vmem:[%s1491_s13 + $0x38] sm:$0xff]   ;;  %v786_v38 = vld [vmem:[#allocation11] ss:$0 sm:$0xff] (!%p785_p12) }
  0xc1   : > { %814 = vmatprep.subr.bf16.mxu0 %v1217_v2 }
  0xc2   : > { %833 = vmatpush3.bf16.msra.mxu1 %v961_v7 }
  0xc3   : > { %834 = vmatprep.subr.bf16.mxu1 %v1217_v2 }
  0xc4   : > { %815 = vmatpush3.bf16.msra.mxu0 %v953_v4 }
  0xc5   : > { %816 = vmatprep.subr.bf16.mxu0 %v1217_v2 }
  0xc6   : > { %835 = vmatpush3.bf16.msra.mxu1 %v962_v9 }
  0xc7   : > { %836 = vmatprep.subr.bf16.mxu1 %v1217_v2 }
  0xc8   : > { %817 = vmatpush3.bf16.msra.mxu0 %v954_v6 }
  0xc9   : > { %818 = vmatprep.subr.bf16.mxu0 %v1217_v2 }
  0xca   : > { %837 = vmatpush3.bf16.msra.mxu1 %v963_v11 }
  0xcb   : > { %838 = vmatprep.subr.bf16.mxu1 %v1217_v2 }
  0xcc   : > { %819 = vmatpush3.bf16.msra.mxu0 %v955_v8 }
  0xcd   : > { %820 = vmatprep.subr.bf16.mxu0 %v1217_v2 }
  0xce   : > { %839 = vmatpush3.bf16.msra.mxu1 %v964_v13 }
  0xcf   : > { %840 = vmatprep.subr.bf16.mxu1 %v1217_v2 }
  0xd0   : > { %821 = vmatpush3.bf16.msra.mxu0 %v956_v10 }
  0xd1   : > { %822 = vmatprep.subr.bf16.mxu0 %v1217_v2 }
  0xd2   : > { %841 = vmatpush3.bf16.msra.mxu1 %v965_v15 }
  0xd3   : > { %842 = vmatprep.subr.bf16.mxu1 %v1217_v2 }
  0xd4   : > { %823 = vmatpush3.bf16.msra.mxu0 %v957_v12 }
  0xd5   : > { %824 = vmatprep.subr.bf16.mxu0 %v1217_v2 }
  0xd6   : > { %843 = vmatpush3.bf16.msra.mxu1 %v966_v17 }
  0xd7   : > { %844 = vmatprep.subr.bf16.mxu1 %v1217_v2 }
  0xd8   : > { %825 = vmatpush3.bf16.msra.mxu0 %v958_v14 }
  0xda   : > { %845 = vmatpush3.bf16.msra.mxu1 %v967_v18 }
  0xdb   : > { %827 = vmatmul.mubr.bf16.vlgmr.msra.gmra.mrb[0].mxu0 %v959_v16 }
 0x1ae   : > { %v476_v20 = vpop.f32.mrb[0].mxu0 }
 0x1af   : > { %v477_v21 = vadd.f32 %v767_v19, %v476_v20  ;;  %v828_v22 = vpop.f32.mrb[1].mxu0 }
 0x1b0   : > { %v479_v23 = vpop.f32.mrb[2].mxu0 }
 0x1b1   : > { %v480_v24 = vadd.f32 %v767_v19, %v479_v23  ;;  %v829_v25 = vpop.f32.mrb[3].mxu0  ;;  %v483_v26 = vmax.f32 %v477_v21, 0.0 }
 0x1b3   : > { %v484_v27 = vmax.f32 %v480_v24, 0.0 }
 0x1b5   : > { %v487_v28 = vpack.c.bf16 %v484_v27, %v483_v26 }
 0x1b7   : > { %847 = vmatmul.mubr.bf16.vlgmr.msra.gmra.mrb[0].mxu1 %v487_v28 }
 0x289   : > { %600 = sbr.rel (%p785_p12) target bundleno = 666 (0x29a), region = 68 }
 0x28a   : > { %v586_v30 = vpop.f32.mrb[0].mxu1 }
 0x28b   : > { %v593_v32 = vadd.f32 %v586_v30, %v485_v29  ;;  %v848_v33 = vpop.f32.mrb[1].mxu1 }
 0x28c   : > { %v589_v34 = vpop.f32.mrb[2].mxu1 }
 0x28d   : > { %595 = vst [vmem:[#allocation2] sm:$0xff] %v593_v32  ;;  %v594_v35 = vadd.f32 %v589_v34, %v486_v31  ;;  %v849_v36 = vpop.f32.mrb[3].mxu1 }
 0x28f   : > { %596 = vst [vmem:[#allocation2 + $0x8] sm:$0xff] %v594_v35 }
 0x294   : > { %v601_v37 = vld [vmem:[#allocation2] sm:$0xff] }
 0x295   : > { %v610_v40 = vadd.f32 %v786_v38, %v601_v37 }
 0x296   : > { %v602_v39 = vld [vmem:[#allocation2 + $0x8] sm:$0xff] }
 0x297   : > { %v611_v41 = vadd.f32 %v786_v38, %v602_v39  ;;  %612 = vst [vmem:[#allocation12] sm:$0xff] %v610_v40 }
 0x299   : > { %613 = vst [vmem:[#allocation12 + $0x8] sm:$0xff] %v611_v41 }
 0x29a PF: > { %p890_p11 = scmp.eq.s32.totalorder %s1281_s24, 1  ;;  %s1219_s26 = smov [#allocation12]  }
 0x29b   : > { %s623_s25 = sshll.u32 %s1219_s26, 4  ;;  %s624_s25 = int_to_ptr.vmem [resolvable:$true] %s623_s25 }
 0x29c   : > { %s1114_s4 = scalar_lea.vmem %s624_s25, 256  ;;  %p1121_p6 = scmp.lt.s32.totalorder %s624_s25, %s624_s25 }
 0x29d   : > { %p1115_p0 = scmp.ne.s32.totalorder %s624_s25, %s1114_s4  ;;  %p1122_p8 = scmp.lt.s32.totalorder %s1114_s4, %s1114_s4 }
 0x29f   : > { %p1116_p7 = pnand %p1115_p0, %p890_p11  ;;  %p1123_p13 = por %p1122_p8, %p1121_p6 }
 0x2a1   : > { %p1117_p10 = pneg %p1116_p7 }
 0x2a3   : > { %p1124_p3 = pnand %p1123_p13, %p1117_p10 }
 0x2a5   : > { %1127 = shalt.err (!%p1124_p3)
}
 0x2a6   : > { %s1128_s9 = scalar_lea.hbm %s1566_s5, 256 }
 0x2a7   : > { %p1129_p1 = scmp.ne.s32.totalorder %s1566_s5, %s1128_s9  ;;  %p1134_p5 = scmp.lt.u32.totalorder %s1128_s9, %s1566_s5 }
 0x2a9   : > { %p1130_p4 = pnand %p1129_p1, %p890_p11 }
 0x2ab   : > { %p1131_p9 = pneg %p1130_p4 }
 0x2ad   : > { %p1136_p2 = pnand %p1134_p5, %p1131_p9 }
 0x2af   : > { %1139 = shalt.err (!%p1136_p2)
}
 0x2b0   : > { %s1220_s10 = smov 128   ;;  %s1221_s11 = smov 8  }
 0x2b1   : > { %865 = dma.vmem_to_hbm [thread:$0]  (%p890_p11), %s624_s25, 256, %s1566_s5, [#allocation5], %s1220_s10, %s1220_s10, %s1221_s11  }
 0x2b2   : > { %1181 = dma.done.wait (%p890_p11), [#allocation5], 256  }
 0x2b3   : > { %1183 = vsyncadd (%p890_p11), [#allocation5], 4294967040 }
 0x2b4 PF: > { %s23_s23 = sadd.s32 1, %s1206_s23   ;;  %s1605_s6 = sld [smem:[#allocation19_spill]] }
 0x2b5   : > { %p20_p12 = scmp.ge.s32.totalorder %s23_s23, 4   ;;  %s1606_s8 = sld [smem:[#allocation18_spill]] }
 0x2b6   : > { %s1607_s18 = smov %s1190_s19  ;;  %s1608_s19 = smov %s1194_s20 }
 0x2b7   : > { %s1610_s21 = smov %s1202_s22  ;;  %22 = sbr.rel (!%p20_p12) target bundleno = 11 (0xb), region = 120 }
 0x2ba   : > { %s1609_s20 = smov %s1605_s6 }
 0x2bb   : > { %s1611_s22 = smov %s1606_s8 }
 0x2be   :  { %639 = vsyncpa [#allocation4], 1 }
 0x2bf   :  { %641 = vsyncpa [#allocation4 + $0x1], 1 }
 0x2c0   :  { %642 = vsyncpa [#allocation7], 1 }
 0x2c1   :  { %644 = vsyncpa [#allocation7 + $0x1], 1 }
 0x2c2   :  { %645 = vsyncpa [#allocation10], 1 }
 0x2c3   :  { %647 = vsyncpa [#allocation10 + $0x1], 1 }
 0x2c4   :  { %648 = vsyncpa [#allocation5], 1 }
 0x2c5   :  { %650 = vsyncpa [#allocation5 + $0x1], 1 }

</bundles_post_ra>
